<compile_context>
chip_gen: v6e
topology: v6e:2x2x1
jax: 0.10.0
libtpu: 0.0.40
codegen_flags: <defaults>
</compile_context>

<pallas_src>
import jax
import jax.numpy as jnp
from jax.experimental import pallas as pl
from jax.experimental.pallas import tpu as pltpu


# ----------------------------- kernel -----------------------------

def _encoder_kernel(x_ref,       # (bt*N, D)        bf16   region features (flattened)
                    lens_ref,    # (bt, 1)          int32  per-item region counts
                    wcat_ref,    # (D, E_pad+H_pad) bf16   [ wfc | w1*bn_scale ]
                    b1_ref,      # (1, H_pad)       f32    folded hidden bias
                    w2_ref,      # (H_pad, E_pad)   bf16   MLP second layer
                    bout_ref,    # (1, E_pad)       f32    folded output bias (bfc+b2)
                    out_ref):    # (bt, E_pad)      f32    l2-normalized embeddings
    m_rows, _ = x_ref.shape                      # m_rows = bt * n_regions
    bt, e_pad = out_ref.shape
    n = m_rows // bt

    # --- single D-contraction on the MXU for both branches (bf16 in, f32 acc) ---
    y = jnp.dot(x_ref[...], wcat_ref[...], preferred_element_type=jnp.float32)
    fc = y[:, :e_pad]                                            # fc branch
    h = jnp.maximum(y[:, e_pad:] + b1_ref[...], 0.0)             # Linear+BN(folded)+ReLU
    mlp = jnp.dot(h.astype(jnp.bfloat16), w2_ref[...],
                  preferred_element_type=jnp.float32)
    emb = fc + mlp + bout_ref[...]                               # (bt*n, E_pad) f32

    # --- length-masked pooling as one block-diagonal matmul ---
    # Row r of the pool matrix selects columns [r*n, r*n + len_r).  The 1/len scale
    # of the original average pooling cancels exactly through the l2norm below.
    col = jax.lax.broadcasted_iota(jnp.int32, (bt, m_rows), 1)
    start = jax.lax.broadcasted_iota(jnp.int32, (bt, 1), 0) * n
    valid = (col >= start) & (col < start + lens_ref[...])
    pooled = jnp.dot(valid.astype(jnp.float32), emb,
                     preferred_element_type=jnp.float32)         # (bt, E_pad)

    # --- l2norm over the embedding dim (single EUP rsqrt) ---
    sumsq = jnp.sum(pooled * pooled, axis=-1, keepdims=True)
    out_ref[...] = pooled * jax.lax.rsqrt(sumsq + 1e-8)


# ----------------------------- wrapper -----------------------------

def _round_up(x, m):
    return ((x + m - 1) // m) * m


def _choose_bt(batch, n_regions, target_rows=512):
    """Batch tile: M = bt*N near target_rows for MXU fill, bt a multiple of 8,
    and >= 2 grid steps when the batch allows it (v7x megacore sharding)."""
    bt = -(-target_rows // n_regions)            # ceil(target / N)
    bt = max(8, -(-bt // 8) * 8)                 # round up to a multiple of 8
    while bt > 8 and -(-batch // bt) < 2:        # keep >= 2 grid steps if possible
        bt -= 8
    return bt


def _const_spec(shape):
    """Block whose index never changes: request single buffering (one VMEM copy)."""
    index_map = lambda b, _shape=shape: (0,) * len(_shape)
    try:
        return pl.BlockSpec(shape, index_map, pipeline_mode=pl.Buffered(1))
    except TypeError:                            # jax without pipeline_mode kwarg
        return pl.BlockSpec(shape, index_map)


def _vmem_limit_bytes():
    # ~80% of physical VMEM: ≈51 MiB on v7x (64 MiB), ≈102 MiB on v5e/v6e (128 MiB).
    try:
        return int(pltpu.get_tpu_info().vmem_capacity_bytes * 0.8)
    except Exception:
        return 64 * 1024 * 1024                  # conservative, fits every generation


def encoder_image_proj_feature(img, img_lengths, params, *, bt=None):
    B, N, D = img.shape
    H, E = params["w2"].shape

    # ---- wrapper-side folding (one-time XLA ops) ----
    w1f = params["w1"] * params["bn_scale"]                         # BN folded into w1
    b1f = params["b1"] * params["bn_scale"] + params["bn_shift"]    # folded hidden bias
    b_out = params["bfc"] + params["b2"]                            # fc bias + mlp bias

    # Lane-align the fc / hidden split: pad E and H to multiples of 128 (zeros).
    E_pad = _round_up(E, 128)
    H_pad = _round_up(H, 128)
    wfc = jnp.pad(params["wfc"], ((0, 0), (0, E_pad - E)))
    w1f = jnp.pad(w1f, ((0, 0), (0, H_pad - H)))
    w_cat = jnp.concatenate([wfc, w1f], axis=1).astype(jnp.bfloat16)   # (D, E_pad+H_pad)
    b1f = jnp.pad(b1f, ((0, 0), (0, H_pad - H))).astype(jnp.float32)
    b_out = jnp.pad(b_out, ((0, 0), (0, E_pad - E))).astype(jnp.float32)
    w2 = jnp.pad(params["w2"], ((0, H_pad - H), (0, E_pad - E))).astype(jnp.bfloat16)

    # ---- batch tiling; flatten regions into the row dim here (not in the kernel) ----
    if bt is None:
        bt = _choose_bt(B, N)
    B_pad = pl.cdiv(B, bt) * bt
    x = img.astype(jnp.bfloat16)
    lens = jnp.asarray(img_lengths, jnp.int32).reshape(B, 1)
    if B_pad != B:
        x = jnp.pad(x, ((0, B_pad - B), (0, 0), (0, 0)))
        lens = jnp.pad(lens, ((0, B_pad - B), (0, 0)))
    x2 = x.reshape(B_pad * N, D)                  # lane/sublane-dense 2D slab

    grid_spec = pltpu.PrefetchScalarGridSpec(
        num_scalar_prefetch=0,
        grid=(B_pad // bt,),
        in_specs=[
            pl.BlockSpec((bt * N, D), lambda b: (b, 0)),   # region features
            pl.BlockSpec((bt, 1),     lambda b: (b, 0)),   # lengths
            _const_spec((D, E_pad + H_pad)),               # fused [wfc | w1*bn]
            _const_spec((1, H_pad)),                       # folded hidden bias
            _const_spec((H_pad, E_pad)),                   # w2
            _const_spec((1, E_pad)),                       # folded output bias
        ],
        out_specs=pl.BlockSpec((bt, E_pad), lambda b: (b, 0)),   # lane-dense slab
    )

    out = pl.pallas_call(
        _encoder_kernel,
        out_shape=jax.ShapeDtypeStruct((B_pad, E_pad), jnp.float32),
        grid_spec=grid_spec,
        compiler_params=pltpu.CompilerParams(
            dimension_semantics=("parallel",),
            vmem_limit_bytes=_vmem_limit_bytes(),
        ),
    )(x2, lens, w_cat, b1f, w2, b_out)
    return out[:B, :E]                                           # (B, E)


# ----------------------------- params & reference -----------------------------

def init_params(key, img_dim, emb_size):
    """Deterministic synthetic parameter init (mirrors shapes in __init__)."""
    H = emb_size // 2
    ks = jax.random.split(key, 5)
    # fc: uniform(-r, r), bias 0  (as in init_weights)
    r = (6.0 ** 0.5) / ((img_dim + emb_size) ** 0.5)
    wfc = jax.random.uniform(ks[0], (img_dim, emb_size), jnp.float32, -r, r)
    bfc = jnp.zeros((1, emb_size), jnp.float32)
    # MLP linear layers: PyTorch default uniform(-1/sqrt(fan_in), 1/sqrt(fan_in))
    r1 = 1.0 / (img_dim ** 0.5)
    w1 = jax.random.uniform(ks[1], (img_dim, H), jnp.float32, -r1, r1)
    b1 = jax.random.uniform(ks[2], (1, H), jnp.float32, -r1, r1)
    r2 = 1.0 / (H ** 0.5)
    w2 = jax.random.uniform(ks[3], (H, emb_size), jnp.float32, -r2, r2)
    b2 = jax.random.uniform(ks[4], (1, emb_size), jnp.float32, -r2, r2)
    # BatchNorm1d (eval mode) folded: gamma=1, beta=0, running_mean=0, running_var=1
    eps = 1e-5
    gamma = jnp.ones((1, H), jnp.float32)
    beta = jnp.zeros((1, H), jnp.float32)
    rmean = jnp.zeros((1, H), jnp.float32)
    rvar = jnp.ones((1, H), jnp.float32)
    bn_scale = gamma / jnp.sqrt(rvar + eps)
    bn_shift = beta - rmean * bn_scale
    return dict(wfc=wfc, bfc=bfc, w1=w1, b1=b1, w2=w2, b2=b2,
                bn_scale=bn_scale, bn_shift=bn_shift)


def reference(img, lengths, p):
    """Pure-JAX reference following the PyTorch forward (bf16 matmul inputs,
    f32 accumulation — matching the kernel's MXU numerics)."""
    B, N, D = img.shape
    H, E = p["w2"].shape
    x = img.astype(jnp.bfloat16).reshape(B * N, D)
    fc = jnp.dot(x, p["wfc"].astype(jnp.bfloat16),
                 preferred_element_type=jnp.float32) + p["bfc"]
    h = jnp.dot(x, p["w1"].astype(jnp.bfloat16),
                preferred_element_type=jnp.float32) + p["b1"]
    h = jnp.maximum(h * p["bn_scale"] + p["bn_shift"], 0.0)      # BN1d(eval) + ReLU
    m = jnp.dot(h.astype(jnp.bfloat16), p["w2"].astype(jnp.bfloat16),
                preferred_element_type=jnp.float32) + p["b2"]
    emb = (fc + m).reshape(B, N, E)
    mask = (jnp.arange(N)[None, :] < lengths[:, None]).astype(jnp.float32)
    pooled = (emb * mask[..., None]).sum(1) / \
        jnp.maximum(lengths, 1)[:, None].astype(jnp.float32)
    norm = jnp.sqrt((pooled ** 2).sum(-1, keepdims=True)) + 1e-8
    return pooled / norm


if __name__ == "__main__":
    B, N, IMG_DIM, EMB = 16, 8, 32, 32

    key = jax.random.PRNGKey(0)
    k_img, k_len, k_param = jax.random.split(key, 3)
    img = jax.random.normal(k_img, (B, N, IMG_DIM), jnp.float32)
    img_lengths = jax.random.randint(k_len, (B,), 1, N + 1).astype(jnp.int32)
    params = init_params(k_param, IMG_DIM, EMB)

    out = encoder_image_proj_feature(img, img_lengths, params)
    out = jax.block_until_ready(out)

    ref = reference(img, img_lengths, params)
    assert out.shape == (B, EMB)
    # Tolerance covers bf16 matmul inputs / MXU accumulation-order differences and
    # the rsqrt(sumsq+eps) vs sqrt(sumsq)+eps formulation of the l2norm.
    assert jnp.allclose(out, ref, atol=2e-3, rtol=2e-3), "mismatch vs JAX reference"
    print("KERNEL_OK")
</pallas_src>

<mosaic_0001>
module attributes {stable_mosaic.version = 11 : i64} {
  func.func @_encoder_kernel(%arg0: i32, %arg1: memref<64x32xbf16, #tpu.memory_space<vmem>>, %arg2: memref<8x1xi32, #tpu.memory_space<vmem>>, %arg3: memref<32x256xbf16, #tpu.memory_space<vmem>>, %arg4: memref<1x128xf32, #tpu.memory_space<vmem>>, %arg5: memref<128x128xbf16, #tpu.memory_space<vmem>>, %arg6: memref<1x128xf32, #tpu.memory_space<vmem>>, %arg7: memref<8x128xf32, #tpu.memory_space<vmem>>) attributes {dimension_semantics = [#tpu.dimension_semantics<parallel>], iteration_bounds = array<i64: 2>, scalar_prefetch = 0 : i64, scratch_operands = 0 : i64, tpu.core_type = #tpu.core_type<tc>, window_params = [{transform_indices = @transform_0, window_bounds = array<i64: 64, 32>}, {transform_indices = @transform_1, window_bounds = array<i64: 8, 1>}, {pipeline_mode = #tpu.pipeline_mode<synchronous>, transform_indices = @transform_2, window_bounds = array<i64: 32, 256>}, {pipeline_mode = #tpu.pipeline_mode<synchronous>, transform_indices = @transform_3, window_bounds = array<i64: 1, 128>}, {pipeline_mode = #tpu.pipeline_mode<synchronous>, transform_indices = @transform_4, window_bounds = array<i64: 128, 128>}, {pipeline_mode = #tpu.pipeline_mode<synchronous>, transform_indices = @transform_5, window_bounds = array<i64: 1, 128>}, {transform_indices = @transform_6, window_bounds = array<i64: 8, 128>}]} {
    %c0 = arith.constant 0 : index
    %c0_0 = arith.constant 0 : index
    %0 = vector.load %arg1[%c0, %c0_0] : memref<64x32xbf16, #tpu.memory_space<vmem>>, vector<64x32xbf16>
    %c0_1 = arith.constant 0 : index
    %c0_2 = arith.constant 0 : index
    %1 = vector.load %arg3[%c0_1, %c0_2] : memref<32x256xbf16, #tpu.memory_space<vmem>>, vector<32x256xbf16>
    %cst = arith.constant dense<0.000000e+00> : vector<64x256xf32>
    %2 = tpu.matmul %0, %1, %cst {dimension_numbers = #tpu.dot_dimension_numbers<[1], [0], [0], [1], [0, 0, 1, 1], [], []>} : vector<64x32xbf16>, vector<32x256xbf16>, vector<64x256xf32> -> vector<64x256xf32>
    %3 = vector.extract_strided_slice %2 {offsets = [0, 0], sizes = [64, 128], strides = [1, 1]} : vector<64x256xf32> to vector<64x128xf32>
    %4 = vector.extract_strided_slice %2 {offsets = [0, 128], sizes = [64, 128], strides = [1, 1]} : vector<64x256xf32> to vector<64x128xf32>
    %c0_3 = arith.constant 0 : index
    %c0_4 = arith.constant 0 : index
    %5 = vector.load %arg4[%c0_3, %c0_4] : memref<1x128xf32, #tpu.memory_space<vmem>>, vector<1x128xf32>
    %6 = vector.broadcast %5 : vector<1x128xf32> to vector<64x128xf32>
    %7 = arith.addf %4, %6 : vector<64x128xf32>
    %cst_5 = arith.constant 0.000000e+00 : f32
    %8 = vector.broadcast %cst_5 : f32 to vector<64x128xf32>
    %9 = arith.maximumf %7, %8 : vector<64x128xf32>
    %10 = arith.truncf %9 : vector<64x128xf32> to vector<64x128xbf16>
    %c0_6 = arith.constant 0 : index
    %c0_7 = arith.constant 0 : index
    %11 = vector.load %arg5[%c0_6, %c0_7] : memref<128x128xbf16, #tpu.memory_space<vmem>>, vector<128x128xbf16>
    %cst_8 = arith.constant dense<0.000000e+00> : vector<64x128xf32>
    %12 = tpu.matmul %10, %11, %cst_8 {dimension_numbers = #tpu.dot_dimension_numbers<[1], [0], [0], [1], [0, 0, 1, 1], [], []>} : vector<64x128xbf16>, vector<128x128xbf16>, vector<64x128xf32> -> vector<64x128xf32>
    %13 = arith.addf %3, %12 : vector<64x128xf32>
    %c0_9 = arith.constant 0 : index
    %c0_10 = arith.constant 0 : index
    %14 = vector.load %arg6[%c0_9, %c0_10] : memref<1x128xf32, #tpu.memory_space<vmem>>, vector<1x128xf32>
    %15 = vector.broadcast %14 : vector<1x128xf32> to vector<64x128xf32>
    %16 = arith.addf %13, %15 : vector<64x128xf32>
    %17 = tpu.iota {dimensions = array<i32: 1>} : vector<8x64xi32>
    %18 = tpu.iota {dimensions = array<i32: 0>} : vector<8x1xi32>
    %c8_i32 = arith.constant 8 : i32
    %19 = vector.broadcast %c8_i32 : i32 to vector<8x1xi32>
    %20 = arith.muli %18, %19 : vector<8x1xi32>
    %21 = vector.broadcast %20 : vector<8x1xi32> to vector<8x64xi32>
    %22 = arith.cmpi sge, %17, %21 : vector<8x64xi32>
    %c0_11 = arith.constant 0 : index
    %c0_12 = arith.constant 0 : index
    %23 = vector.load %arg2[%c0_11, %c0_12] : memref<8x1xi32, #tpu.memory_space<vmem>>, vector<8x1xi32>
    %24 = arith.addi %20, %23 : vector<8x1xi32>
    %25 = vector.broadcast %24 : vector<8x1xi32> to vector<8x64xi32>
    %26 = arith.cmpi slt, %17, %25 : vector<8x64xi32>
    %27 = arith.andi %22, %26 : vector<8x64xi1>
    %28 = arith.extui %27 : vector<8x64xi1> to vector<8x64xi32>
    %29 = arith.sitofp %28 : vector<8x64xi32> to vector<8x64xf32>
    %cst_13 = arith.constant dense<0.000000e+00> : vector<8x128xf32>
    %30 = tpu.matmul %29, %16, %cst_13 {dimension_numbers = #tpu.dot_dimension_numbers<[1], [0], [0], [1], [0, 0, 1, 1], [], []>} : vector<8x64xf32>, vector<64x128xf32>, vector<8x128xf32> -> vector<8x128xf32>
    %31 = arith.mulf %30, %30 : vector<8x128xf32>
    %cst_14 = arith.constant dense<0.000000e+00> : vector<8xf32>
    %32 = vector.multi_reduction <add>, %31, %cst_14 [1] : vector<8x128xf32> to vector<8xf32>
    %33 = vector.shape_cast %32 : vector<8xf32> to vector<8x1xf32>
    %cst_15 = arith.constant 9.99999993E-9 : f32
    %34 = vector.broadcast %cst_15 : f32 to vector<8x1xf32>
    %35 = arith.addf %33, %34 : vector<8x1xf32>
    %36 = math.rsqrt %35 : vector<8x1xf32>
    %37 = vector.broadcast %36 : vector<8x1xf32> to vector<8x128xf32>
    %38 = arith.mulf %30, %37 : vector<8x128xf32>
    %c0_16 = arith.constant 0 : index
    %c0_17 = arith.constant 0 : index
    %39 = vector.load %arg7[%c0_16, %c0_17] : memref<8x128xf32, #tpu.memory_space<vmem>>, vector<8x128xf32>
    tpu.vector_store %arg7[%c0_16, %c0_17], %38 {strides = array<i32>} : memref<8x128xf32, #tpu.memory_space<vmem>>, vector<8x128xf32>,
    return
  }
  func.func @transform_0(%arg0: i32) -> (i32, i32) {
    %c0_i32 = arith.constant 0 : i32
    %c0_i32_0 = arith.constant 0 : i32
    return %arg0, %c0_i32 : i32, i32
  }
  func.func @transform_1(%arg0: i32) -> (i32, i32) {
    %c0_i32 = arith.constant 0 : i32
    %c0_i32_0 = arith.constant 0 : i32
    return %arg0, %c0_i32 : i32, i32
  }
  func.func @transform_2(%arg0: i32) -> (i32, i32) {
    %c0_i32 = arith.constant 0 : i32
    %c0_i32_0 = arith.constant 0 : i32
    %c0_i32_1 = arith.constant 0 : i32
    return %c0_i32, %c0_i32_0 : i32, i32
  }
  func.func @transform_3(%arg0: i32) -> (i32, i32) {
    %c0_i32 = arith.constant 0 : i32
    %c0_i32_0 = arith.constant 0 : i32
    %c0_i32_1 = arith.constant 0 : i32
    return %c0_i32, %c0_i32_0 : i32, i32
  }
  func.func @transform_4(%arg0: i32) -> (i32, i32) {
    %c0_i32 = arith.constant 0 : i32
    %c0_i32_0 = arith.constant 0 : i32
    %c0_i32_1 = arith.constant 0 : i32
    return %c0_i32, %c0_i32_0 : i32, i32
  }
  func.func @transform_5(%arg0: i32) -> (i32, i32) {
    %c0_i32 = arith.constant 0 : i32
    %c0_i32_0 = arith.constant 0 : i32
    %c0_i32_1 = arith.constant 0 : i32
    return %c0_i32, %c0_i32_0 : i32, i32
  }
  func.func @transform_6(%arg0: i32) -> (i32, i32) {
    %c0_i32 = arith.constant 0 : i32
    %c0_i32_0 = arith.constant 0 : i32
    return %arg0, %c0_i32 : i32, i32
  }
}

</mosaic_0001>

<bundles_post_ra>
// kernel: tpu_custom_call.1
= control target key start
LH: loop header
LB: loop body
LE: loop exit
PB: predicated region body
PF: predicated region fallthrough
CT: control target
= control target key end

     0   :  { %11 = vsyncpa [#allocation3], 0  ;;  %s1180_s0 = inlined_call_operand.vmem [shape: bf16[128,32], index: 0, kind: input, shape index: {}]   ;;  %s1181_s1 = inlined_call_operand.vmem [shape: s32[16,1], index: 1, kind: input, shape index: {}]   ;;  %s1182_s2 = inlined_call_operand.vmem [shape: bf16[32,256], index: 2, kind: input, shape index: {}]   ;;  %s1183_s3 = inlined_call_operand.vmem [shape: f32[1,128], index: 3, kind: input, shape index: {}]   ;;  %s1184_s4 = inlined_call_operand.vmem [shape: bf16[128,128], index: 4, kind: input, shape index: {}]   ;;  %s1185_s5 = inlined_call_operand.vmem [shape: f32[1,128], index: 5, kind: input, shape index: {}]   ;;  %s1186_s6 = inlined_call_operand.hbm [shape: f32[16,128], index: 6, kind: output, shape index: {}]  }
   0x1   :  { %13 = vsyncpa [#allocation3 + $0x1], 0  ;;  %s1032_s21 = smov 0   ;;  %s1034_s22 = smov 0  }
   0x2   :  { %s1036_s23 = smov 0   ;;  %s1038_s24 = smov 0  }
   0x3 LB: > { %s1053_s25 = sadd.s32 4294967295, %s991_s24   ;;  %s768_s26 = sadd.s32 4294967294, %s991_s24   ;;  %s991_s24 = sphi %s1038_s24, %s1192_s24   ;;  %s987_s23 = sphi %s1036_s23, %s1191_s23   ;;  %s983_s22 = sphi %s1034_s22, %s1190_s22   ;;  %s979_s21 = sphi %s1032_s21, %s1189_s21  }
   0x4   : > { %s1057_s27 = sadd.s32 1, %s991_s24   ;;  %s162_s28 = sadd.s32 1, %s987_s23 }
   0x5   : > { %s159_s29 = ssub.s32 %s991_s24, %s1057_s27  ;;  %p172_p0 = scmp.ne.s32.totalorder %s987_s23, %s983_s22 }
   0x6   : > { %p160_p1 = scmp.eq.s32.totalorder %s159_s29, 0  ;;  %p173_p2 = scmp.eq.s32.totalorder %s1053_s25, 1 }
   0x7   : > { %p178_p3 = scmp.ne.s32.totalorder %s983_s22, %s979_s21  ;;  %p179_p4 = scmp.eq.s32.totalorder %s768_s26, 1 }
   0x8   : > { %s1068_s30 = scalar_select %p160_p1, %s987_s23, %s162_s28  }
   0x9   : > { %p1070_p5 = por %p173_p2, %p172_p0  ;;  %p1074_p6 = por %p179_p4, %p178_p3 }
   0xa   : > { %p771_p7 = scmp.ge.s32.totalorder %s991_s24, 1  ;;  %p225_p8 = scmp.lt.s32.totalorder %s991_s24, 3 }
   0xc   : > { %p226_p9 = pnand %p771_p7, %p225_p8 }
   0xd   : > { %s773_s11 = sshll.u32 (!%p226_p9), %s1053_s25, 3  ;;  %p265_p11 = scmp.lt.s32.totalorder (!%p226_p9), %s1053_s25, 1 }
   0xe   : > { %229 = sbr.rel (%p226_p9) target bundleno = 838 (0x346), region = 44  ;;  %p260_p10 = scmp.lt.s32.totalorder (!%p226_p9), %s773_s11, 15 }
   0xf   : > { %s256_s17 = sand.u32 (!%p226_p9), 1, %s983_s22   ;;  %s801_s19 = sshll.u32 (!%p226_p9), %s1053_s25, 7 }
  0x10   : > { %s772_s18 = sshll.u32 (!%p226_p9), %s256_s17, 3  ;;  %s684_s10 = scalar_lea.sflag (!%p226_p9), [#allocation3], %s256_s17 }
  0x11   : > { %s258_s20 = scalar_lea.vmem (!%p226_p9), [#allocation2], %s772_s18 }
  0x12   : > { %s697_s26 = sshll.u32 (!%p226_p9), %s258_s20, 4  ;;  %s698_s26 = int_to_ptr.vmem [resolvable:$true] %s697_s26 }
  0x13   : > { %v911_v0 = vld [vmem:[%s1182_s2 + $0x14] ss:$8 sps:$4 sm:$0xff]   ;;  %v913_v1 = vld [vmem:[%s1182_s2 + $0x10] ss:$8 sps:$4 sm:$0xff]   ;;  %v993_v2 = vmov 0   ;;  %s1194_s11 = smov (!%p260_p10, %s773_s11), 15  ;;  %v587_v17 = vlaneseq }
  0x14   : > { %367 = vmatprep.mubr.bf16.mxu0 %v993_v2  ;;  %910 = vset.pattern.permute.xlu0 %v993_v2  ;;  %v914_v3 = vld [vmem:[%s1182_s2 + $0x4] ss:$8 sps:$4 sm:$0xff]   ;;  %v916_v4 = vld [vmem:[%s1182_s2] ss:$8 sps:$4 sm:$0xff]   ;;  %v921_v5 = vld [vmem:[%s1184_s4 + $0x38] sm:$0xff]   ;;  %s774_s28 = sshll.u32 %s1194_s11, 2 }
  0x15   : > { %347 = vmatprep.subr.bf16.mxu0 %v911_v0  ;;  %v922_v6 = vld [vmem:[%s1184_s4 + $0x30] sm:$0xff]   ;;  %825 = vmatprep.subr.bf16.mxu1 %v921_v5  ;;  %v923_v7 = vld [vmem:[%s1184_s4 + $0x28] sm:$0xff]   ;;  %s263_s13 = scalar_lea.vmem %s1180_s0, %s774_s28  ;;  %vm322_vm0 = vcmask 261120   ;;  %v924_v12 = vld [vmem:[%s1184_s4 + $0x20] sm:$0xff]   ;;  %v1123_v18 = vshrl.u32 %v587_v17, 7  ;;  %v994_v59 = vmov 0.0  }
  0x16   : > { %348 = vmatpush1.bf16.msra.mxu0 %v913_v1  ;;  %826 = vmatpush3.bf16.msra.mxu1 %v921_v5  ;;  %v917_v8 = vld [vmem:[%s263_s13] sm:$0xff]   ;;  %v918_v9 = vld [vmem:[%s263_s13 + $0x8] sm:$0xff]   ;;  %v919_v10 = vld [vmem:[%s263_s13 + $0x10] sm:$0xff]   ;;  %s266_s29 = scalar_select %p265_p11, %s1053_s25, 1  ;;  %vm995_vm1 = vmmov 0   ;;  %vm602_vm5 = vcmask 523264  }
  0x17   : > { %349 = vmatprep.subr.bf16.mxu0 %v914_v3  ;;  %827 = vmatprep.subr.bf16.mxu1 %v922_v6  ;;  %v920_v11 = vld [vmem:[%s263_s13 + $0x18] sm:$0xff]   ;;  %v926_v14 = vld [vmem:[%s1184_s4 + $0x10] sm:$0xff]   ;;  %v927_v15 = vld [vmem:[%s1184_s4 + $0x8] sm:$0xff]   ;;  %v591_v19 = vmul.u32 8, %v1123_v18  ;;  %s931_s12 = scalar_lea.vmem %s698_s26, 128 }
  0x18   : > { %v925_v13 = vld [vmem:[%s1184_s4 + $0x18] sm:$0xff]   ;;  %v928_v16 = vld [vmem:[%s1184_s4] sm:$0xff]   ;;  %s775_s9 = sshll.u32 %s266_s29, 3  ;;  %p932_p12 = scmp.ne.s32.totalorder %s698_s26, %s931_s12 }
  0x19   : > { %s268_s13 = scalar_lea.vmem %s1181_s1, %s775_s9  ;;  %v788_v24 = vld [vmem:[%s1183_s3] ss:$0 sm:$0xff]  ;;  %s695_s9 = scalar_lea.hbm %s1186_s6, %s801_s19 }
  0x1a   : > { %350 = vmatpush1.bf16.msra.mxu0 %v916_v4  ;;  %828 = vmatpush3.bf16.msra.mxu1 %v922_v6  ;;  %v593_v20 = vld [vmem:[%s268_s13] sm:$0xff]  ;;  %p933_p13 = pnand %p932_p12, %p1070_p5  ;;  %s996_s13 = smov [#allocation2]  }
  0x1b   : > { %829 = vmatprep.subr.bf16.mxu1 %v923_v7  ;;  %v594_v21 = vadd.s32 %v593_v20, %v591_v19  ;;  %849 = vmatprep.subr.mxu0 %v994_v59  ;;  %v797_v5 = vld [vmem:[%s1185_s5] ss:$0 sm:$0xff]  ;;  %s935_s11 = sshll.u32 %s996_s13, 4  ;;  %s936_s11 = int_to_ptr.vmem [resolvable:$false] %s935_s11 }
  0x1c   : > { %p934_p0 = pneg %p933_p13  ;;  %s937_s25 = scalar_lea.vmem %s936_s11, 256 }
  0x1d   : > { %784 = vmatmul.mubr.msk.bf16.vlgmr.msra.gmra.mxu0 %vm322_vm0, %v917_v8  ;;  %596 = vperm.xlu0 %910, %v594_v21   ;;  %p938_p1 = scmp.lt.s32.totalorder %s698_s26, %s936_s11  ;;  %p939_p2 = scmp.lt.s32.totalorder %s937_s25, %s931_s12 }
  0x1e   : > { %377 = vmatprep.mubr.bf16.mxu0 %v993_v2  ;;  %830 = vmatpush3.bf16.msra.mxu1 %v923_v7 }
  0x1f   : > { %831 = vmatprep.subr.bf16.mxu1 %v924_v12  ;;  %p940_p3 = por %p939_p2, %p938_p1 }
  0x21   : > { %p941_p4 = pnand %p940_p3, %p934_p0 }
  0x22   : > { %832 = vmatpush3.bf16.msra.mxu1 %v924_v12 }
  0x23   : > { %833 = vmatprep.subr.bf16.mxu1 %v925_v13 }
  0x25   : > { %785 = vmatmul.mubr.msk.bf16.gmra.mxu0 %vm322_vm0, %v918_v9 }
  0x26   : > { %387 = vmatprep.mubr.bf16.mxu0 %v993_v2  ;;  %834 = vmatpush3.bf16.msra.mxu1 %v925_v13  ;;  %v588_v13 = vand.u32 127, %v587_v17 }
  0x27   : > { %835 = vmatprep.subr.bf16.mxu1 %v926_v14 }
  0x28   : > { %vm592_vm2 = vcmp.ge.s32.totalorder %v588_v13, %v591_v19 }
  0x2a   : > { %836 = vmatpush3.bf16.msra.mxu1 %v926_v14 }
  0x2b   : > { %837 = vmatprep.subr.bf16.mxu1 %v927_v15 }
  0x2d   : > { %786 = vmatmul.mubr.msk.bf16.gmra.mxu0 %vm322_vm0, %v919_v10 }
  0x2e   : > { %397 = vmatprep.mubr.bf16.mxu0 %v993_v2  ;;  %838 = vmatpush3.bf16.msra.mxu1 %v927_v15 }
  0x2f   : > { %839 = vmatprep.subr.bf16.mxu1 %v928_v16 }
  0x32   : > { %840 = vmatpush3.bf16.msra.mxu1 %v928_v16 }
  0x35   : > { %787 = vmatmul.mubr.msk.bf16.gmra.mxu0 %vm322_vm0, %v920_v11 }
  0x36   : > { %865 = vmatprep.mubr.msk.f32.mxu0 %vm995_vm1, %v994_v59 }
  0x98   : > { %v597_v14 = vpop.permute.xlu0 %596 }
  0x99   : > { %vm598_vm3 = vcmp.lt.s32.totalorder %v588_v13, %v597_v14 }
  0x9a   : > { %vm599_vm4 = vmand %vm592_vm2, %vm598_vm3 }
  0xdd   : > { %v1131_v22 = vpop.f32.mrf.mxu0 }
  0xdf   : > { %v371_v23 = vpop.f32.mrf.mxu0 }
  0xe0   : > { %v415_v26 = vadd.f32 %v788_v24, %v371_v23 }
  0xe1   : > { %v1136_v25 = vpop.f32.mrf.mxu0 }
  0xe2   : > { %v423_v30 = vmax.f32 %v415_v26, 0.0 }
  0xe3   : > { %v375_v27 = vpop.f32.mrf.mxu0 }
  0xe4   : > { %v416_v28 = vadd.f32 %v788_v24, %v375_v27  ;;  %v798_v27 = vsel %vm599_vm4, 1.0, %v994_v59 }
  0xe5   : > { %v379_v29 = vpop.f32.mrf.mxu0 }
  0xe6   : > { %v424_v31 = vmax.f32 %v416_v28, 0.0 }
  0xe7   : > { %v381_v32 = vpop.f32.mrf.mxu0 }
  0xe8   : > { %v431_v33 = vpack.c.bf16 %v424_v31, %v423_v30  ;;  %v417_v35 = vadd.f32 %v788_v24, %v381_v32 }
  0xe9   : > { %v383_v34 = vpop.f32.mrf.mxu0 }
  0xea   : > { %841 = vmatprep.mubr.bf16.mxu1 %v431_v33  ;;  %v425_v39 = vmax.f32 %v417_v35, 0.0 }
  0xeb   : > { %v385_v36 = vpop.f32.mrf.mxu0 }
  0xec   : > { %v418_v37 = vadd.f32 %v788_v24, %v385_v36 }
  0xed   : > { %v389_v38 = vpop.f32.mrf.mxu0 }
  0xee   : > { %v426_v40 = vmax.f32 %v418_v37, 0.0 }
  0xef   : > { %v391_v41 = vpop.f32.mrf.mxu0 }
  0xf0   : > { %v432_v42 = vpack.c.bf16 %v426_v40, %v425_v39  ;;  %v419_v44 = vadd.f32 %v788_v24, %v391_v41 }
  0xf1   : > { %v393_v43 = vpop.f32.mrf.mxu0 }
  0xf2   : > { %842 = vmatmul.mubr.bf16.vlgmr.msra.gmra.mxu1 %v432_v42  ;;  %v427_v48 = vmax.f32 %v419_v44, 0.0 }
  0xf3   : > { %v395_v45 = vpop.f32.mrf.mxu0 }
  0xf4   : > { %v420_v46 = vadd.f32 %v788_v24, %v395_v45 }
  0xf5   : > { %v399_v47 = vpop.f32.mrf.mxu0 }
  0xf6   : > { %v428_v49 = vmax.f32 %v420_v46, 0.0 }
  0xf7   : > { %v401_v50 = vpop.f32.mrf.mxu0 }
  0xf8   : > { %v433_v51 = vpack.c.bf16 %v428_v49, %v427_v48  ;;  %v421_v53 = vadd.f32 %v788_v24, %v401_v50 }
  0xf9   : > { %v403_v52 = vpop.f32.mrf.mxu0 }
  0xfa   : > { %845 = vmatprep.mubr.bf16.mxu1 %v433_v51  ;;  %v429_v56 = vmax.f32 %v421_v53, 0.0 }
  0xfb   : > { %v405_v54 = vpop.f32.mrf.mxu0 }
  0xfc   : > { %v422_v55 = vadd.f32 %v788_v24, %v405_v54 }
  0xfe   : > { %v430_v57 = vmax.f32 %v422_v55, 0.0 }
 0x100   : > { %v434_v58 = vpack.c.bf16 %v430_v57, %v429_v56 }
 0x102   : > { %846 = vmatmul.mubr.bf16.gmra.mxu1 %v434_v58 }
 0x1b2   : > { %v843_v60 = vpop.f32.mrf.mxu1 }
 0x1b3   : > { %v566_v15 = vadd.f32 %v843_v60, %v379_v29 }
 0x1b4   : > { %v533_v61 = vpop.f32.mrf.mxu1 }
 0x1b5   : > { %v581_v23 = vadd.f32 %v797_v5, %v566_v15  ;;  %v564_v24 = vadd.f32 %v533_v61, %v1131_v22 }
 0x1b6   : > { %v844_v62 = vpop.f32.mrf.mxu1 }
 0x1b7   : > { %v567_v11 = vadd.f32 %v844_v62, %v383_v34  ;;  %v579_v26 = vadd.f32 %v797_v5, %v564_v24 }
 0x1b8   : > { %v536_v63 = vpop.f32.mrf.mxu1 }
 0x1b9   : > { %v582_v20 = vadd.f32 %v797_v5, %v567_v11  ;;  %v565_v21 = vadd.f32 %v536_v63, %v1136_v25 }
 0x1bb   : > { %v580_v17 = vadd.f32 %v797_v5, %v565_v21 }
 0x1c2   : > { %v847_v0 = vpop.f32.mrf.mxu1 }
 0x1c3   : > { %v570_v3 = vadd.f32 %v847_v0, %v399_v47 }
 0x1c4   : > { %v549_v1 = vpop.f32.mrf.mxu1 }
 0x1c5   : > { %v585_v9 = vadd.f32 %v797_v5, %v570_v3  ;;  %v568_v10 = vadd.f32 %v549_v1, %v389_v38 }
 0x1c6   : > { %v848_v2 = vpop.f32.mrf.mxu1 }
 0x1c7   : > { %v571_v4 = vadd.f32 %v848_v2, %v403_v52  ;;  %v583_v16 = vadd.f32 %v797_v5, %v568_v10 }
 0x1c8   : > { %v552_v6 = vpop.f32.mrf.mxu1 }
 0x1c9   : > { %v586_v7 = vadd.f32 %v797_v5, %v571_v4  ;;  %v569_v8 = vadd.f32 %v552_v6, %v393_v43 }
 0x1cb   : > { %850 = vmatpush3.msra.mxu0 %v586_v7  ;;  %v584_v12 = vadd.f32 %v797_v5, %v569_v8 }
 0x1cc   : > { %851 = vmatprep.subr.mxu0 %v994_v59 }
 0x1cd   : > { %852 = vmatpush3.msra.mxu0 %v585_v9 }
 0x1ce   : > { %853 = vmatprep.subr.mxu0 %v994_v59 }
 0x1cf   : > { %854 = vmatpush3.msra.mxu0 %v584_v12 }
 0x1d0   : > { %855 = vmatprep.subr.mxu0 %v994_v59 }
 0x1d1   : > { %856 = vmatpush3.msra.mxu0 %v583_v16 }
 0x1d2   : > { %857 = vmatprep.subr.mxu0 %v994_v59 }
 0x1d3   : > { %858 = vmatpush3.msra.mxu0 %v582_v20 }
 0x1d4   : > { %859 = vmatprep.subr.mxu0 %v994_v59 }
 0x1d5   : > { %860 = vmatpush3.msra.mxu0 %v581_v23 }
 0x1d6   : > { %861 = vmatprep.subr.mxu0 %v994_v59 }
 0x1d7   : > { %862 = vmatpush3.msra.mxu0 %v580_v17 }
 0x1d8   : > { %863 = vmatprep.subr.mxu0 %v994_v59 }
 0x1d9   : > { %864 = vmatpush3.msra.mxu0 %v579_v26 }
 0x1da   : > { %866 = vmatmul.mubr.msk.f32.vlgmr.msra.gmra.mxu0 %vm602_vm5, %v798_v27 }
 0x29a   : > { %v672_v18 = vpop.f32.mrf.mxu0 }
 0x29b   : > { %v676_v19 = vmul.f32 %v672_v18, %v672_v18 }
 0x29c   : > { %v867_v25 = vpop.f32.mrf.mxu0 }
 0x29d   : > { %677 = vadd.xlane.f32.xlu0 %v676_v19 }
 0x326   : > { %v678_v22 = vpop.xlane.xlu0 %677 }
 0x327   : > { %v679_v28 = vadd.f32 1e-08, %v678_v22 }
 0x329   : > { %929 = vrsqrt.f32 %v679_v28 }
 0x336   : > { %v930_v29 = vpop.eup %929 }
 0x337   : > { %v681_v30 = vmul.f32 %v930_v29, %v672_v18 }
 0x339   : > { %682 = vst [vmem:[%s258_s20] sm:$0xff] %v681_v30 }
 0x33a   : > { %944 = shalt.err (!%p941_p4)
}
 0x33b   : > { %s945_s14 = scalar_lea.hbm %s695_s9, 128  ;;  %s949_s17 = scalar_lea.hbm %s1186_s6, 256 }
 0x33c   : > { %p946_p7 = scmp.ne.s32.totalorder %s695_s9, %s945_s14  ;;  %p950_p10 = scmp.lt.s32.totalorder %s695_s9, %s1186_s6 }
 0x33d   : > { %p951_p11 = scmp.lt.s32.totalorder %s949_s17, %s945_s14 }
 0x33e   : > { %p947_p8 = pnand %p946_p7, %p1070_p5 }
 0x33f   : > { %p952_p12 = por %p951_p11, %p950_p10 }
 0x340   : > { %p948_p9 = pneg %p947_p8 }
 0x342   : > { %p953_p13 = pnand %p952_p12, %p948_p9 }
 0x344   : > { %956 = shalt.err (!%p953_p13)
}
 0x345   : > { %868 = dma.vmem_to_hbm [thread:$0]  (%p1070_p5), %s698_s26, 128, %s695_s9, %s684_s10  }
 0x346 PF: > { %p874_p0 = scmp.ge.s32.totalorder %s991_s24, 2  ;;  %s709_s20 = sand.u32 1, %s979_s21  }
 0x347   : > { %s710_s28 = scalar_lea.sflag [#allocation3], %s709_s20 }
 0x348   : > { %p871_p1 = pnand %p874_p0, %p1074_p6 }
 0x34a   : > { %p872_p2 = pneg %p871_p1 }
 0x34c   : > { %974 = dma.done.wait (%p872_p2), %s710_s28, 128  }
 0x34d   : > { %976 = vsyncadd (%p872_p2), %s710_s28, 4294967168  ;;  %p16_p3 = scmp.ge.s32.totalorder %s1057_s27, 4   ;;  %s1189_s21 = smov %s983_s22 }
 0x34e   : > { %s1190_s22 = smov %s987_s23  ;;  %s1191_s23 = smov %s1068_s30 }
 0x34f   : > { %s1192_s24 = smov %s1057_s27  ;;  %18 = sbr.rel (!%p16_p3) target bundleno = 3 (0x3), region = 82 }
 0x354   :  { %715 = vsyncpa [#allocation3], 1 }
 0x355   :  { %717 = vsyncpa [#allocation3 + $0x1], 1 }

</bundles_post_ra>
